<compile_context>
chip_gen: v7x
topology: tpu7x:2x2x1
jax: 0.10.0
libtpu: 0.0.40
codegen_flags: <defaults>
</compile_context>

<pallas_src>
import jax
import jax.numpy as jnp
from jax import lax
from jax.experimental import pallas as pl
from jax.experimental.pallas import tpu as pltpu


def _round_up(v, m):
    return (v + m - 1) // m * m


def _make_kernel(total_b, with_feat, eps=1e-5):
    inv_n = 1.0 / float(total_b)

    def kernel(x_ref, w1_ref, gamma_ref, beta_ref, w2_ref, b2_ref, *refs):
        if with_feat:
            logits_ref, feat_ref = refs[0], refs[1]
            sum_ref, sq_ref, scale_ref, shift_ref = refs[2:]
        else:
            logits_ref, feat_ref = refs[0], None
            sum_ref, sq_ref, scale_ref, shift_ref = refs[1:]

        p = pl.program_id(0)   # phase: 0 = batch statistics, 1 = apply
        i = pl.program_id(1)   # batch tile

        # First linear on the MXU: bf16 @ bf16 -> f32 accumulate.
        # NOTE: Linear bias b1 is intentionally omitted -- with batch-stat
        # BatchNorm it cancels exactly in (h - mean).
        h = jnp.dot(x_ref[...], w1_ref[...],
                    preferred_element_type=jnp.float32)        # (TB, HP) f32

        @pl.when(p == 0)
        def _stats():
            @pl.when(i == 0)
            def _init():
                sum_ref[...] = jnp.zeros_like(sum_ref)
                sq_ref[...] = jnp.zeros_like(sq_ref)
            sum_ref[...] += jnp.sum(h, axis=0, keepdims=True)
            sq_ref[...] += jnp.sum(h * h, axis=0, keepdims=True)

        @pl.when(p == 1)
        def _apply():
            @pl.when(i == 0)
            def _fold_bn():
                mean = sum_ref[...] * inv_n
                var = sq_ref[...] * inv_n - mean * mean        # biased variance
                scale = gamma_ref[...] * lax.rsqrt(var + eps)
                scale_ref[...] = scale
                shift_ref[...] = beta_ref[...] - mean * scale

            # Folded BN (single mul-add over the big tile) + ReLU, in f32.
            feat = jnp.maximum(h * scale_ref[...] + shift_ref[...], 0.0)
            if with_feat:
                feat_ref[...] = feat

            logits_ref[...] = (
                jnp.dot(feat.astype(jnp.bfloat16), w2_ref[...],
                        preferred_element_type=jnp.float32)
                + b2_ref[...])

    return kernel


def classifier_forward(x, params, fe=False):
    """x: (B, dim_embedding) f32.  params: dict from init_params."""
    B, D = x.shape
    H = params["w1"].shape[1]
    C = params["w2"].shape[1]

    HP = _round_up(H, 128)                      # lane-dense hidden width
    CP = _round_up(C, 128)                      # lane-dense class width
    TB = 256 if B >= 256 else _round_up(B, 8)   # batch tile (sublane aligned)
    BP = _round_up(B, TB)
    nb = BP // TB

    # --- pad + cast once in the wrapper (bf16 into the MXU, zero lane padding) ---
    xp = jnp.zeros((BP, D), jnp.bfloat16).at[:B].set(x.astype(jnp.bfloat16))
    w1p = jnp.zeros((D, HP), jnp.bfloat16).at[:, :H].set(
        params["w1"].astype(jnp.bfloat16))
    gammap = jnp.zeros((1, HP), jnp.float32).at[:, :H].set(params["gamma"])
    betap = jnp.zeros((1, HP), jnp.float32).at[:, :H].set(params["beta"])
    w2p = jnp.zeros((HP, CP), jnp.bfloat16).at[:H, :C].set(
        params["w2"].astype(jnp.bfloat16))
    b2p = jnp.zeros((1, CP), jnp.float32).at[:, :C].set(params["b2"])

    in_specs = [
        pl.BlockSpec((TB, D), lambda p, i: (i, 0)),     # x, tiled over batch
        pl.BlockSpec((D, HP), lambda p, i: (0, 0)),     # w1 (resident)
        pl.BlockSpec((1, HP), lambda p, i: (0, 0)),     # gamma
        pl.BlockSpec((1, HP), lambda p, i: (0, 0)),     # beta
        pl.BlockSpec((HP, CP), lambda p, i: (0, 0)),    # w2 (resident)
        pl.BlockSpec((1, CP), lambda p, i: (0, 0)),     # b2
    ]
    logits_spec = pl.BlockSpec((TB, CP), lambda p, i: (i, 0))
    feat_spec = pl.BlockSpec((TB, HP), lambda p, i: (i, 0))
    scratch = [pltpu.VMEM((1, HP), jnp.float32)] * 4    # sum, sumsq, scale, shift

    if fe:
        out_shape = (jax.ShapeDtypeStruct((BP, CP), jnp.float32),
                     jax.ShapeDtypeStruct((BP, HP), jnp.float32))
        out_specs = (logits_spec, feat_spec)
    else:
        out_shape = jax.ShapeDtypeStruct((BP, CP), jnp.float32)
        out_specs = logits_spec

    kernel = _make_kernel(total_b=B, with_feat=fe)
    result = pl.pallas_call(
        kernel,
        out_shape=out_shape,
        grid=(2, nb),                    # (phase, batch tile); phase is slowest
        in_specs=in_specs,
        out_specs=out_specs,
        scratch_shapes=scratch,
        compiler_params=pltpu.CompilerParams(
            dimension_semantics=("arbitrary", "arbitrary"),
            vmem_limit_bytes=48 * 1024 * 1024),
    )(xp, w1p, gammap, betap, w2p, b2p)

    if fe:
        logits, feat = result
        return logits[:B, :C], feat[:B, :H]
    return result[:B, :C]


def init_params(key, dim_embedding, dim_hidden, num_classes):
    k1, k2, k3, k4 = jax.random.split(key, 4)
    bound1 = 1.0 / jnp.sqrt(dim_embedding)
    bound2 = 1.0 / jnp.sqrt(dim_hidden)
    return {
        # stored pre-transposed as (in, out) so the kernel computes x @ W (+ b)
        "w1": jax.random.uniform(k1, (dim_embedding, dim_hidden), jnp.float32,
                                 -bound1, bound1),
        "b1": jax.random.uniform(k2, (1, dim_hidden), jnp.float32, -bound1, bound1),
        "gamma": jnp.ones((1, dim_hidden), jnp.float32),   # BatchNorm1d weight
        "beta": jnp.zeros((1, dim_hidden), jnp.float32),   # BatchNorm1d bias
        "w2": jax.random.uniform(k3, (dim_hidden, num_classes), jnp.float32,
                                 -bound2, bound2),
        "b2": jax.random.uniform(k4, (1, num_classes), jnp.float32,
                                 -bound2, bound2),
    }


def reference_forward(x, params):
    """Pure-JAX f32 reference matching PyTorch training-mode semantics
    (including b1, which cancels under batch-stat BN)."""
    h = x @ params["w1"] + params["b1"]
    mean = jnp.mean(h, axis=0, keepdims=True)
    var = jnp.mean((h - mean) ** 2, axis=0, keepdims=True)
    h = (h - mean) * lax.rsqrt(var + 1e-5)
    h = h * params["gamma"] + params["beta"]
    feat = jnp.maximum(h, 0.0)
    return feat @ params["w2"] + params["b2"], feat


if __name__ == "__main__":
    # TODO(synk): eval-mode BatchNorm (running_mean/running_var) not implemented;
    # this matches PyTorch training-mode BN batch statistics.
    B, D_EMB, D_HID, N_CLS = 8, 32, 64, 8

    key = jax.random.PRNGKey(0)
    kx, kp = jax.random.split(key)
    x = jax.random.normal(kx, (B, D_EMB), jnp.float32)
    params = init_params(kp, D_EMB, D_HID, N_CLS)

    logits, feat = classifier_forward(x, params, fe=True)
    logits_only = classifier_forward(x, params, fe=False)
    jax.block_until_ready((logits, feat, logits_only))

    ref_logits, ref_feat = reference_forward(x, params)
    assert logits.shape == (B, N_CLS) and feat.shape == (B, D_HID)
    # bf16 MXU inputs -> loosened tolerance vs. f32 reference
    assert jnp.allclose(logits, ref_logits, atol=5e-2, rtol=5e-2)
    assert jnp.allclose(feat, ref_feat, atol=5e-2, rtol=5e-2)
    assert jnp.allclose(logits_only, logits, atol=1e-5, rtol=1e-5)

    print("KERNEL_OK")
</pallas_src>

<mosaic_0001>
module attributes {stable_mosaic.version = 11 : i64} {
  func.func @kernel(%arg0: i32, %arg1: i32, %arg2: memref<8x32xbf16, #tpu.memory_space<vmem>>, %arg3: memref<32x128xbf16, #tpu.memory_space<vmem>>, %arg4: memref<1x128xf32, #tpu.memory_space<vmem>>, %arg5: memref<1x128xf32, #tpu.memory_space<vmem>>, %arg6: memref<128x128xbf16, #tpu.memory_space<vmem>>, %arg7: memref<1x128xf32, #tpu.memory_space<vmem>>, %arg8: memref<8x128xf32, #tpu.memory_space<vmem>>, %arg9: memref<8x128xf32, #tpu.memory_space<vmem>>, %arg10: memref<1x128xf32, #tpu.memory_space<vmem>>, %arg11: memref<1x128xf32, #tpu.memory_space<vmem>>, %arg12: memref<1x128xf32, #tpu.memory_space<vmem>>, %arg13: memref<1x128xf32, #tpu.memory_space<vmem>>) attributes {dimension_semantics = [#tpu.dimension_semantics<arbitrary>, #tpu.dimension_semantics<arbitrary>], iteration_bounds = array<i64: 2, 1>, scalar_prefetch = 0 : i64, scratch_operands = 4 : i64, tpu.core_type = #tpu.core_type<tc>, window_params = [{transform_indices = @transform_0, window_bounds = array<i64: 8, 32>}, {pipeline_mode = #tpu.pipeline_mode<synchronous>, transform_indices = @transform_1, window_bounds = array<i64: 32, 128>}, {pipeline_mode = #tpu.pipeline_mode<synchronous>, transform_indices = @transform_2, window_bounds = array<i64: 1, 128>}, {pipeline_mode = #tpu.pipeline_mode<synchronous>, transform_indices = @transform_3, window_bounds = array<i64: 1, 128>}, {pipeline_mode = #tpu.pipeline_mode<synchronous>, transform_indices = @transform_4, window_bounds = array<i64: 128, 128>}, {pipeline_mode = #tpu.pipeline_mode<synchronous>, transform_indices = @transform_5, window_bounds = array<i64: 1, 128>}, {transform_indices = @transform_6, window_bounds = array<i64: 8, 128>}, {transform_indices = @transform_7, window_bounds = array<i64: 8, 128>}]} {
    %c0 = arith.constant 0 : index
    %c0_0 = arith.constant 0 : index
    %0 = vector.load %arg2[%c0, %c0_0] : memref<8x32xbf16, #tpu.memory_space<vmem>>, vector<8x32xbf16>
    %c0_1 = arith.constant 0 : index
    %c0_2 = arith.constant 0 : index
    %1 = vector.load %arg3[%c0_1, %c0_2] : memref<32x128xbf16, #tpu.memory_space<vmem>>, vector<32x128xbf16>
    %cst = arith.constant dense<0.000000e+00> : vector<8x128xf32>
    %2 = tpu.matmul %0, %1, %cst {dimension_numbers = #tpu.dot_dimension_numbers<[1], [0], [0], [1], [0, 0, 1, 1], [], []>} : vector<8x32xbf16>, vector<32x128xbf16>, vector<8x128xf32> -> vector<8x128xf32>
    %c0_i32 = arith.constant 0 : i32
    %3 = arith.cmpi eq, %arg0, %c0_i32 : i32
    %4 = arith.extui %3 : i1 to i32
    %c0_i32_3 = arith.constant 0 : i32
    %5 = arith.cmpi ne, %4, %c0_i32_3 : i32
    scf.if %5 {
      %c0_i32_5 = arith.constant 0 : i32
      %9 = arith.cmpi eq, %arg1, %c0_i32_5 : i32
      %10 = arith.extui %9 : i1 to i32
      %c0_i32_6 = arith.constant 0 : i32
      %11 = arith.cmpi ne, %10, %c0_i32_6 : i32
      scf.if %11 {
        %cst_17 = arith.constant 0.000000e+00 : f32
        %23 = vector.broadcast %cst_17 : f32 to vector<1x128xf32>
        %c0_18 = arith.constant 0 : index
        %c0_19 = arith.constant 0 : index
        %24 = vector.load %arg10[%c0_18, %c0_19] : memref<1x128xf32, #tpu.memory_space<vmem>>, vector<1x128xf32>
        tpu.vector_store %arg10[%c0_18, %c0_19], %23 {strides = array<i32>} : memref<1x128xf32, #tpu.memory_space<vmem>>, vector<1x128xf32>,
        %cst_20 = arith.constant 0.000000e+00 : f32
        %25 = vector.broadcast %cst_20 : f32 to vector<1x128xf32>
        %c0_21 = arith.constant 0 : index
        %c0_22 = arith.constant 0 : index
        %26 = vector.load %arg11[%c0_21, %c0_22] : memref<1x128xf32, #tpu.memory_space<vmem>>, vector<1x128xf32>
        tpu.vector_store %arg11[%c0_21, %c0_22], %25 {strides = array<i32>} : memref<1x128xf32, #tpu.memory_space<vmem>>, vector<1x128xf32>,
      } else {
      }
      %c0_7 = arith.constant 0 : index
      %c0_8 = arith.constant 0 : index
      %12 = vector.load %arg10[%c0_7, %c0_8] : memref<1x128xf32, #tpu.memory_space<vmem>>, vector<1x128xf32>
      %cst_9 = arith.constant dense<0.000000e+00> : vector<128xf32>
      %13 = vector.multi_reduction <add>, %2, %cst_9 [0] : vector<8x128xf32> to vector<128xf32>
      %14 = vector.shape_cast %13 : vector<128xf32> to vector<1x128xf32>
      %15 = arith.addf %12, %14 : vector<1x128xf32>
      %c0_10 = arith.constant 0 : index
      %c0_11 = arith.constant 0 : index
      %16 = vector.load %arg10[%c0_10, %c0_11] : memref<1x128xf32, #tpu.memory_space<vmem>>, vector<1x128xf32>
      tpu.vector_store %arg10[%c0_10, %c0_11], %15 {strides = array<i32>} : memref<1x128xf32, #tpu.memory_space<vmem>>, vector<1x128xf32>,
      %c0_12 = arith.constant 0 : index
      %c0_13 = arith.constant 0 : index
      %17 = vector.load %arg11[%c0_12, %c0_13] : memref<1x128xf32, #tpu.memory_space<vmem>>, vector<1x128xf32>
      %18 = arith.mulf %2, %2 : vector<8x128xf32>
      %cst_14 = arith.constant dense<0.000000e+00> : vector<128xf32>
      %19 = vector.multi_reduction <add>, %18, %cst_14 [0] : vector<8x128xf32> to vector<128xf32>
      %20 = vector.shape_cast %19 : vector<128xf32> to vector<1x128xf32>
      %21 = arith.addf %17, %20 : vector<1x128xf32>
      %c0_15 = arith.constant 0 : index
      %c0_16 = arith.constant 0 : index
      %22 = vector.load %arg11[%c0_15, %c0_16] : memref<1x128xf32, #tpu.memory_space<vmem>>, vector<1x128xf32>
      tpu.vector_store %arg11[%c0_15, %c0_16], %21 {strides = array<i32>} : memref<1x128xf32, #tpu.memory_space<vmem>>, vector<1x128xf32>,
    } else {
    }
    %c1_i32 = arith.constant 1 : i32
    %6 = arith.cmpi eq, %arg0, %c1_i32 : i32
    %7 = arith.extui %6 : i1 to i32
    %c0_i32_4 = arith.constant 0 : i32
    %8 = arith.cmpi ne, %7, %c0_i32_4 : i32
    scf.if %8 {
      %c0_i32_5 = arith.constant 0 : i32
      %9 = arith.cmpi eq, %arg1, %c0_i32_5 : i32
      %10 = arith.extui %9 : i1 to i32
      %c0_i32_6 = arith.constant 0 : i32
      %11 = arith.cmpi ne, %10, %c0_i32_6 : i32
      scf.if %11 {
        %c0_21 = arith.constant 0 : index
        %c0_22 = arith.constant 0 : index
        %28 = vector.load %arg10[%c0_21, %c0_22] : memref<1x128xf32, #tpu.memory_space<vmem>>, vector<1x128xf32>
        %cst_23 = arith.constant 1.250000e-01 : f32
        %29 = vector.broadcast %cst_23 : f32 to vector<1x128xf32>
        %30 = arith.mulf %28, %29 : vector<1x128xf32>
        %c0_24 = arith.constant 0 : index
        %c0_25 = arith.constant 0 : index
        %31 = vector.load %arg11[%c0_24, %c0_25] : memref<1x128xf32, #tpu.memory_space<vmem>>, vector<1x128xf32>
        %cst_26 = arith.constant 1.250000e-01 : f32
        %32 = vector.broadcast %cst_26 : f32 to vector<1x128xf32>
        %33 = arith.mulf %31, %32 : vector<1x128xf32>
        %34 = arith.mulf %30, %30 : vector<1x128xf32>
        %35 = arith.subf %33, %34 : vector<1x128xf32>
        %c0_27 = arith.constant 0 : index
        %c0_28 = arith.constant 0 : index
        %36 = vector.load %arg4[%c0_27, %c0_28] : memref<1x128xf32, #tpu.memory_space<vmem>>, vector<1x128xf32>
        %cst_29 = arith.constant 9.99999974E-6 : f32
        %37 = vector.broadcast %cst_29 : f32 to vector<1x128xf32>
        %38 = arith.addf %35, %37 : vector<1x128xf32>
        %39 = math.rsqrt %38 : vector<1x128xf32>
        %40 = arith.mulf %36, %39 : vector<1x128xf32>
        %c0_30 = arith.constant 0 : index
        %c0_31 = arith.constant 0 : index
        %41 = vector.load %arg12[%c0_30, %c0_31] : memref<1x128xf32, #tpu.memory_space<vmem>>, vector<1x128xf32>
        tpu.vector_store %arg12[%c0_30, %c0_31], %40 {strides = array<i32>} : memref<1x128xf32, #tpu.memory_space<vmem>>, vector<1x128xf32>,
        %c0_32 = arith.constant 0 : index
        %c0_33 = arith.constant 0 : index
        %42 = vector.load %arg5[%c0_32, %c0_33] : memref<1x128xf32, #tpu.memory_space<vmem>>, vector<1x128xf32>
        %43 = arith.mulf %30, %40 : vector<1x128xf32>
        %44 = arith.subf %42, %43 : vector<1x128xf32>
        %c0_34 = arith.constant 0 : index
        %c0_35 = arith.constant 0 : index
        %45 = vector.load %arg13[%c0_34, %c0_35] : memref<1x128xf32, #tpu.memory_space<vmem>>, vector<1x128xf32>
        tpu.vector_store %arg13[%c0_34, %c0_35], %44 {strides = array<i32>} : memref<1x128xf32, #tpu.memory_space<vmem>>, vector<1x128xf32>,
      } else {
      }
      %c0_7 = arith.constant 0 : index
      %c0_8 = arith.constant 0 : index
      %12 = vector.load %arg12[%c0_7, %c0_8] : memref<1x128xf32, #tpu.memory_space<vmem>>, vector<1x128xf32>
      %13 = vector.broadcast %12 : vector<1x128xf32> to vector<8x128xf32>
      %14 = arith.mulf %2, %13 : vector<8x128xf32>
      %c0_9 = arith.constant 0 : index
      %c0_10 = arith.constant 0 : index
      %15 = vector.load %arg13[%c0_9, %c0_10] : memref<1x128xf32, #tpu.memory_space<vmem>>, vector<1x128xf32>
      %16 = vector.broadcast %15 : vector<1x128xf32> to vector<8x128xf32>
      %17 = arith.addf %14, %16 : vector<8x128xf32>
      %cst_11 = arith.constant 0.000000e+00 : f32
      %18 = vector.broadcast %cst_11 : f32 to vector<8x128xf32>
      %19 = arith.maximumf %17, %18 : vector<8x128xf32>
      %c0_12 = arith.constant 0 : index
      %c0_13 = arith.constant 0 : index
      %20 = vector.load %arg9[%c0_12, %c0_13] : memref<8x128xf32, #tpu.memory_space<vmem>>, vector<8x128xf32>
      tpu.vector_store %arg9[%c0_12, %c0_13], %19 {strides = array<i32>} : memref<8x128xf32, #tpu.memory_space<vmem>>, vector<8x128xf32>,
      %21 = arith.truncf %19 : vector<8x128xf32> to vector<8x128xbf16>
      %c0_14 = arith.constant 0 : index
      %c0_15 = arith.constant 0 : index
      %22 = vector.load %arg6[%c0_14, %c0_15] : memref<128x128xbf16, #tpu.memory_space<vmem>>, vector<128x128xbf16>
      %cst_16 = arith.constant dense<0.000000e+00> : vector<8x128xf32>
      %23 = tpu.matmul %21, %22, %cst_16 {dimension_numbers = #tpu.dot_dimension_numbers<[1], [0], [0], [1], [0, 0, 1, 1], [], []>} : vector<8x128xbf16>, vector<128x128xbf16>, vector<8x128xf32> -> vector<8x128xf32>
      %c0_17 = arith.constant 0 : index
      %c0_18 = arith.constant 0 : index
      %24 = vector.load %arg7[%c0_17, %c0_18] : memref<1x128xf32, #tpu.memory_space<vmem>>, vector<1x128xf32>
      %25 = vector.broadcast %24 : vector<1x128xf32> to vector<8x128xf32>
      %26 = arith.addf %23, %25 : vector<8x128xf32>
      %c0_19 = arith.constant 0 : index
      %c0_20 = arith.constant 0 : index
      %27 = vector.load %arg8[%c0_19, %c0_20] : memref<8x128xf32, #tpu.memory_space<vmem>>, vector<8x128xf32>
      tpu.vector_store %arg8[%c0_19, %c0_20], %26 {strides = array<i32>} : memref<8x128xf32, #tpu.memory_space<vmem>>, vector<8x128xf32>,
    } else {
    }
    return
  }
  func.func @transform_0(%arg0: i32, %arg1: i32) -> (i32, i32) {
    %c0_i32 = arith.constant 0 : i32
    %c0_i32_0 = arith.constant 0 : i32
    return %arg1, %c0_i32 : i32, i32
  }
  func.func @transform_1(%arg0: i32, %arg1: i32) -> (i32, i32) {
    %c0_i32 = arith.constant 0 : i32
    %c0_i32_0 = arith.constant 0 : i32
    %c0_i32_1 = arith.constant 0 : i32
    return %c0_i32, %c0_i32_0 : i32, i32
  }
  func.func @transform_2(%arg0: i32, %arg1: i32) -> (i32, i32) {
    %c0_i32 = arith.constant 0 : i32
    %c0_i32_0 = arith.constant 0 : i32
    %c0_i32_1 = arith.constant 0 : i32
    return %c0_i32, %c0_i32_0 : i32, i32
  }
  func.func @transform_3(%arg0: i32, %arg1: i32) -> (i32, i32) {
    %c0_i32 = arith.constant 0 : i32
    %c0_i32_0 = arith.constant 0 : i32
    %c0_i32_1 = arith.constant 0 : i32
    return %c0_i32, %c0_i32_0 : i32, i32
  }
  func.func @transform_4(%arg0: i32, %arg1: i32) -> (i32, i32) {
    %c0_i32 = arith.constant 0 : i32
    %c0_i32_0 = arith.constant 0 : i32
    %c0_i32_1 = arith.constant 0 : i32
    return %c0_i32, %c0_i32_0 : i32, i32
  }
  func.func @transform_5(%arg0: i32, %arg1: i32) -> (i32, i32) {
    %c0_i32 = arith.constant 0 : i32
    %c0_i32_0 = arith.constant 0 : i32
    %c0_i32_1 = arith.constant 0 : i32
    return %c0_i32, %c0_i32_0 : i32, i32
  }
  func.func @transform_6(%arg0: i32, %arg1: i32) -> (i32, i32) {
    %c0_i32 = arith.constant 0 : i32
    %c0_i32_0 = arith.constant 0 : i32
    return %arg1, %c0_i32 : i32, i32
  }
  func.func @transform_7(%arg0: i32, %arg1: i32) -> (i32, i32) {
    %c0_i32 = arith.constant 0 : i32
    %c0_i32_0 = arith.constant 0 : i32
    return %arg1, %c0_i32 : i32, i32
  }
}

</mosaic_0001>

<bundles_post_ra>
// kernel: tpu_custom_call.1
= control target key start
LH: loop header
LB: loop body
LE: loop exit
PB: predicated region body
PF: predicated region fallthrough
CT: control target
= control target key end

     0   :  { %13 = vsyncpa [#allocation7], 0  ;;  %s1265_s0 = inlined_call_operand.hbm [shape: bf16[8,32], index: 0, kind: input, shape index: {}]   ;;  %s1266_s1 = inlined_call_operand.hbm [shape: bf16[32,128], index: 1, kind: input, shape index: {}]   ;;  %s1267_s2 = inlined_call_operand.vmem [shape: f32[1,128], index: 2, kind: input, shape index: {}]   ;;  %s1268_s3 = inlined_call_operand.vmem [shape: f32[1,128], index: 3, kind: input, shape index: {}]   ;;  %s1269_s4 = inlined_call_operand.hbm [shape: bf16[128,128], index: 4, kind: input, shape index: {}]   ;;  %s1270_s5 = inlined_call_operand.vmem [shape: f32[1,128], index: 5, kind: input, shape index: {}]   ;;  %s1271_s6 = inlined_call_operand.hbm [shape: f32[8,128], index: 6, kind: output, shape index: {0}]   ;;  %s1272_s7 = inlined_call_operand.hbm [shape: f32[8,128], index: 7, kind: output, shape index: {1}]  }
   0x1   :  { %14 = vsyncpa [#allocation10], 0 }
   0x2   :  { %15 = vsyncpa [#allocation8], 0 }
   0x3   :  { %16 = vsyncpa [#allocation14], 0  ;;  %s1053_s24 = smov 0   ;;  %s1055_s25 = smov 0  }
   0x4   :  { %s1057_s26 = smov 0  }
   0x5 LB: > { %s1001_s27 = smov [#allocation9]   ;;  %s666_s29 = sadd.s32 4294967295, %s999_s26   ;;  %s999_s26 = sphi %s1057_s26, %s22_s26   ;;  %s995_s25 = sphi %s1055_s25, %s1285_s25   ;;  %s991_s24 = sphi %s1053_s24, %s1284_s24  }
   0x6   : > { %s247_s28 = sshll.u32 %s1001_s27, 4  ;;  %p667_p0 = scmp.ge.s32.totalorder %s999_s26, 1  ;;  %s1077_s28 = int_to_ptr.vmem [resolvable:$true] %s247_s28 }
   0x7   : > { %p222_p1 = scmp.lt.s32.totalorder %s999_s26, 3  ;;  %p1073_p2 = scmp.eq.s32.totalorder %s666_s29, 0 }
   0x8   : > { %s34_s10 = sadd.s32 1, %s995_s25  ;;  %s1002_s12 = smov [#allocation6]  }
   0x9   : > { %s1276_s30 = scalar_select %p1073_p2, 1, 0 }
   0xa   : > { %p1079_p3 = pnand %p667_p0, %p222_p1  ;;  %p1092_p6 = scmp.ge.s32.totalorder %s34_s10, 2 }
   0xb   : > { %s237_s13 = sshll.u32 %s1002_s12, 4  ;;  %s825_s16 = scalar_lea.hbm %s1266_s1, 256  ;;  %s238_s13 = int_to_ptr.vmem [resolvable:$true] %s237_s13 }
   0xc   : > { %s1277_s8 = scalar_select %p1079_p3, 1, 0 }
   0xd   : > { %p757_p4 = pneg %p1079_p3  ;;  %p826_p7 = scmp.ne.s32.totalorder %s1266_s1, %s825_s16 }
   0xe   : > { %p832_p11 = scmp.lt.u32.totalorder %s825_s16, %s1266_s1 }
   0xf   : > { %p1087_p5 = pnand %p1073_p2, %p757_p4 }
  0x11   : > { %p1104_p8 = pneg %p1087_p5 }
  0x13   : > { %p828_p9 = pnand %p1104_p8, %p826_p7 }
  0x15   : > { %p829_p10 = pneg %p828_p9 }
  0x17   : > { %p834_p12 = pnand %p832_p11, %p829_p10 }
  0x19   : > { %837 = shalt.err (!%p834_p12)
}
  0x1a   : > { %s838_s22 = scalar_lea.vmem %s1077_s28, 256  ;;  %p846_p4 = scmp.lt.s32.totalorder %s1077_s28, %s1077_s28 }
  0x1b   : > { %p839_p13 = scmp.ne.s32.totalorder %s1077_s28, %s838_s22  ;;  %p847_p2 = scmp.lt.s32.totalorder %s838_s22, %s838_s22 }
  0x1d   : > { %p841_p0 = pnand %p839_p13, %p1104_p8  ;;  %p848_p7 = por %p847_p2, %p846_p4 }
  0x1f   : > { %p842_p1 = pneg %p841_p0 }
  0x21   : > { %p849_p9 = pnand %p848_p7, %p842_p1 }
  0x23   : > { %852 = shalt.err (!%p849_p9)
}
  0x24   : > { %s1003_s23 = smov 64   ;;  %s1004_s27 = smov 4  }
  0x25   : > { %763 = dma.hbm_to_vmem [thread:$0]  (!%p1087_p5), %s1266_s1, 256, %s1077_s28, [#allocation10], %s1003_s23, %s1003_s23, %s1004_s27  }
  0x26   : > { %s1287_s10 = smov (%p1092_p6, %s34_s10), 0  ;;  %s853_s17 = scalar_lea.hbm %s1265_s0, 64 }
  0x27   : > { %p854_p2 = scmp.ne.s32.totalorder %s1265_s0, %s853_s17  ;;  %p860_p12 = scmp.lt.u32.totalorder %s853_s17, %s1265_s0 }
  0x29   : > { %p856_p10 = pnand %p854_p2, %p1104_p8 }
  0x2b   : > { %p857_p11 = pneg %p856_p10 }
  0x2d   : > { %p862_p13 = pnand %p860_p12, %p857_p11 }
  0x2f   : > { %865 = shalt.err (!%p862_p13)
}
  0x30   : > { %s866_s28 = scalar_lea.vmem %s238_s13, 64  ;;  %p874_p4 = scmp.lt.s32.totalorder %s238_s13, %s238_s13 }
  0x31   : > { %p867_p6 = scmp.ne.s32.totalorder %s238_s13, %s866_s28  ;;  %p875_p7 = scmp.lt.s32.totalorder %s866_s28, %s866_s28 }
  0x33   : > { %p869_p0 = pnand %p867_p6, %p1104_p8  ;;  %p876_p9 = por %p875_p7, %p874_p4 }
  0x35   : > { %p870_p1 = pneg %p869_p0 }
  0x37   : > { %p877_p3 = pnand %p876_p9, %p870_p1 }
  0x39   : > { %880 = shalt.err (!%p877_p3)
}
  0x3a   : > { %760 = dma.hbm_to_vmem [thread:$0]  (!%p1087_p5), %s1265_s0, 64, %s238_s13, [#allocation7]  }
  0x3b   : > { %s1005_s14 = smov [#allocation11]   ;;  %s881_s18 = scalar_lea.hbm %s1269_s4, 1024 }
  0x3c   : > { %s266_s15 = sshll.u32 %s1005_s14, 4  ;;  %p882_p2 = scmp.ne.s32.totalorder %s1269_s4, %s881_s18  ;;  %s267_s15 = int_to_ptr.vmem [resolvable:$true] %s266_s15 }
  0x3d   : > { %p888_p11 = scmp.lt.u32.totalorder %s881_s18, %s1269_s4 }
  0x3e   : > { %p884_p3 = pnand %p882_p2, %p1104_p8 }
  0x40   : > { %p885_p10 = pneg %p884_p3 }
  0x42   : > { %p890_p12 = pnand %p888_p11, %p885_p10 }
  0x44   : > { %893 = shalt.err (!%p890_p12)
}
  0x45   : > { %s894_s13 = scalar_lea.vmem %s267_s15, 1024  ;;  %p902_p1 = scmp.lt.s32.totalorder %s267_s15, %s267_s15 }
  0x46   : > { %p895_p13 = scmp.ne.s32.totalorder %s267_s15, %s894_s13  ;;  %p903_p4 = scmp.lt.s32.totalorder %s894_s13, %s894_s13 }
  0x48   : > { %p897_p6 = pnand %p895_p13, %p1104_p8  ;;  %p904_p7 = por %p903_p4, %p902_p1 }
  0x4a   : > { %p898_p0 = pneg %p897_p6 }
  0x4c   : > { %p905_p9 = pnand %p904_p7, %p898_p0 }
  0x4e   : > { %908 = shalt.err (!%p905_p9)
}
  0x4f   : > { %766 = dma.hbm_to_vmem [thread:$0]  (!%p1087_p5), %s1269_s4, 1024, %s267_s15, [#allocation10], %s1003_s23, %s1003_s23, %s1004_s27  }
  0x50   : > { %p1281_p2 = scmp.ne.s32.totalorder %s1277_s8, 0 }
  0x51   : > { %p1282_p8 = scmp.ne.s32.totalorder (!%p1281_p2), %s1276_s30, 0 }
  0x52   : > { %285 = sbr.rel (%p1281_p2) target bundleno = 637 (0x27d), region = 44 }
  0x59   : > { %974 = dma.done.wait (%p1282_p8), [#allocation7], 64  }
  0x5a   : > { %976 = vsyncadd (%p1282_p8), [#allocation7], 4294967232 }
  0x5b   : > { %978 = dma.done.wait (%p1282_p8), [#allocation10], 1280  }
  0x5c   : > { %980 = vsyncadd (%p1282_p8), [#allocation10], 4294966016  ;;  %v1006_v0 = vmov 0.0   ;;  %vm1007_vm0 = vmmov 0   ;;  %v813_v1 = vld [vmem:[#allocation9] sm:$0xff]   ;;  %v814_v2 = vld [vmem:[#allocation9 + $0x8] sm:$0xff]  }
  0x5d   : > { %709 = vmatprep.subr.bf16.mxu0 %v1006_v0  ;;  %713 = vmatprep.mubr.msk.bf16.mxu0 %vm1007_vm0, %v1006_v0  ;;  %v316_v3 = vld [vmem:[#allocation6] sm:$0xf]  ;;  %vm333_vm1 = vcmask 261120   ;;  %p678_p5 = scmp.ne.s32.totalorder %s991_s24, 0 }
  0x5e   : > { %710 = vmatpush3.bf16.msra.mxu0 %v813_v1  ;;  %v1008_v10 = vmov (!%p678_p5), 0.0  }
  0x5f   : > { %711 = vmatprep.subr.bf16.mxu0 %v1006_v0  ;;  %385 = vst [vmem:[#allocation2] sm:$0x1] (!%p678_p5), %v1008_v10  ;;  %386 = vst [vmem:[#allocation3] sm:$0x1] (!%p678_p5), %v1008_v10 }
  0x62   : > { %712 = vmatpush3.bf16.msra.mxu0 %v814_v2 }
  0x65   : > { %714 = vmatmul.mubr.msk.bf16.vlgmr.msra.gmra.mrb[0].mxu0 %vm333_vm1, %v316_v3 }
  0x66   : > { %v387_v19 = vld [vmem:[#allocation2] sm:$0x1] (!%p678_p5)  ;;  %v396_v22 = vld [vmem:[#allocation3] sm:$0x1] (!%p678_p5) }
 0x135   : > { %380 = sbr.rel (%p678_p5) target bundleno = 330 (0x14a), region = 60 }
 0x138   : > { %v1181_v4 = vpop.f32.mrb[0].mxu0 }
 0x139   : > { %v715_v5 = vpop.f32.mrb[1].mxu0  ;;  %v388_v8 = vrot.slane (!%p678_p5), %v1181_v4, 4  ;;  %v397_v9 = vmul.f32 (!%p678_p5), %v1181_v4, %v1181_v4 }
 0x13a   : > { %v374_v6 = vpop.f32.mrb[2].mxu0 }
 0x13b   : > { %v716_v7 = vpop.f32.mrb[3].mxu0  ;;  %v389_v11 = vadd.f32 (!%p678_p5), %v388_v8, %v1181_v4  ;;  %v398_v12 = vrot.slane (!%p678_p5), %v397_v9, 4 }
 0x13d   : > { %v390_v13 = vrot.slane %v389_v11, 2  ;;  %v399_v14 = vadd.f32 %v398_v12, %v397_v9 }
 0x13f   : > { %v391_v15 = vadd.f32 %v390_v13, %v389_v11  ;;  %v400_v16 = vrot.slane %v399_v14, 2 }
 0x141   : > { %v392_v17 = vrot.slane %v391_v15, 1  ;;  %v401_v18 = vadd.f32 %v400_v16, %v399_v14 }
 0x143   : > { %v393_v20 = vadd.f32 %v392_v17, %v391_v15  ;;  %v402_v21 = vrot.slane %v401_v18, 1 }
 0x145   : > { %v394_v23 = vadd.f32 %v393_v20, %v387_v19  ;;  %v403_v24 = vadd.f32 %v402_v21, %v401_v18 }
 0x147   : > { %395 = vst [vmem:[#allocation2] sm:$0x1] %v394_v23  ;;  %v404_v25 = vadd.f32 %v403_v24, %v396_v22 }
 0x149   : > { %405 = vst [vmem:[#allocation3] sm:$0x1] %v404_v25 }
 0x14a PF: > { %p679_p3 = scmp.ne.s32.totalorder %s991_s24, 1 }
 0x14b   : > { %v815_v26 = vld [vmem:[#allocation11] sm:$0xff] (!%p679_p3)   ;;  %v1009_v27 = vmov (!%p679_p3), 0.0   ;;  %v816_v28 = vld [vmem:[#allocation11 + $0x8] sm:$0xff] (!%p679_p3)   ;;  %vm1010_vm2 = vmmov (!%p679_p3), 0   ;;  %v817_v29 = vld [vmem:[#allocation11 + $0x10] sm:$0xff] (!%p679_p3)  }
 0x14c   : > { %409 = sbr.rel (%p679_p3) target bundleno = 589 (0x24d), region = 68  ;;  %717 = vmatprep.subr.bf16.mxu0 (!%p679_p3), %v1009_v27  ;;  %733 = vmatprep.mubr.msk.bf16.mxu0 (!%p679_p3), %vm1010_vm2, %v1009_v27  ;;  %v818_v34 = vld [vmem:[#allocation11 + $0x18] sm:$0xff] (!%p679_p3)   ;;  %v819_v37 = vld [vmem:[#allocation11 + $0x20] sm:$0xff] (!%p679_p3)   ;;  %v820_v39 = vld [vmem:[#allocation11 + $0x28] sm:$0xff] (!%p679_p3)  }
 0x14d   : > { %718 = vmatpush3.bf16.msra.mxu0 (!%p679_p3), %v815_v26  ;;  %v821_v40 = vld [vmem:[#allocation11 + $0x30] sm:$0xff] (!%p679_p3)   ;;  %v420_v41 = vld [vmem:[%s1267_s2] sm:$0x1] (!%p679_p3)  ;;  %v822_v42 = vld [vmem:[#allocation11 + $0x38] sm:$0xff] (!%p679_p3)  }
 0x14e   : > { %719 = vmatprep.subr.bf16.mxu0 (!%p679_p3), %v1009_v27  ;;  %v414_v30 = vld [vmem:[#allocation2] sm:$0x1] (!%p679_p3) }
 0x14f   : > { %v415_v32 = vmul.f32 (!%p679_p3), 0.125, %v414_v30  ;;  %v425_v45 = vld [vmem:[%s1268_s3] sm:$0x1] (!%p679_p3) }
 0x150   : > { %v416_v31 = vld [vmem:[#allocation3] sm:$0x1] (!%p679_p3)  ;;  %v682_v54 = vld [vmem:[%s1270_s5] ss:$0 sm:$0xff] (!%p679_p3) }
 0x151   : > { %720 = vmatpush3.bf16.msra.mxu0 (!%p679_p3), %v816_v28  ;;  %v417_v33 = vmul.f32 (!%p679_p3), 0.125, %v416_v31  ;;  %v418_v35 = vmul.f32 (!%p679_p3), %v415_v32, %v415_v32 }
 0x152   : > { %721 = vmatprep.subr.bf16.mxu0 (!%p679_p3), %v1009_v27 }
 0x153   : > { %v419_v36 = vsub.f32 %v417_v33, %v418_v35 }
 0x155   : > { %722 = vmatpush3.bf16.msra.mxu0 %v817_v29  ;;  %v421_v38 = vadd.f32 1e-05, %v419_v36 }
 0x156   : > { %723 = vmatprep.subr.bf16.mxu0 %v1009_v27 }
 0x157   : > { %823 = vrsqrt.f32 %v421_v38 }
 0x159   : > { %724 = vmatpush3.bf16.msra.mxu0 %v818_v34 }
 0x15a   : > { %725 = vmatprep.subr.bf16.mxu0 %v1009_v27 }
 0x15d   : > { %726 = vmatpush3.bf16.msra.mxu0 %v819_v37 }
 0x15e   : > { %727 = vmatprep.subr.bf16.mxu0 %v1009_v27 }
 0x161   : > { %728 = vmatpush3.bf16.msra.mxu0 %v820_v39  ;;  %v824_v43 = vpop.eup %823 }
 0x162   : > { %729 = vmatprep.subr.bf16.mxu0 %v1009_v27  ;;  %v423_v44 = vmul.f32 %v824_v43, %v420_v41 }
 0x164   : > { %424 = vst [vmem:[#allocation4] sm:$0x1] %v423_v44  ;;  %v426_v46 = vmul.f32 %v423_v44, %v415_v32 }
 0x165   : > { %730 = vmatpush3.bf16.msra.mxu0 %v821_v40 }
 0x166   : > { %731 = vmatprep.subr.bf16.mxu0 %v1009_v27  ;;  %v427_v47 = vsub.f32 %v425_v45, %v426_v46 }
 0x168   : > { %428 = vst [vmem:[#allocation5] sm:$0x1] %v427_v47 }
 0x169   : > { %732 = vmatpush3.bf16.msra.mxu0 %v822_v42 }
 0x16b   : > { %v680_v48 = vld [vmem:[#allocation4] ss:$0 sm:$0xff] }
 0x16c   : > { %v436_v49 = vmul.f32 %v680_v48, %v1181_v4 }
 0x16f   : > { %v681_v50 = vld [vmem:[#allocation5] ss:$0 sm:$0xff] }
 0x170   : > { %v444_v51 = vadd.f32 %v681_v50, %v436_v49 }
 0x172   : > { %v445_v52 = vmax.f32 %v444_v51, 0.0 }
 0x174   : > { %446 = vst [vmem:[#allocation13] sm:$0xff] %v445_v52  ;;  %v447_v53 = vpack.c.bf16 %v445_v52, %v445_v52 }
 0x176   : > { %734 = vmatmul.mubr.bf16.vlgmr.msra.gmra.mrb[0].mxu0 %v447_v53 }
 0x249   : > { %v553_v55 = vpop.f32.mrb[0].mxu0 }
 0x24a   : > { %v554_v56 = vadd.f32 %v682_v54, %v553_v55  ;;  %v735_v57 = vpop.f32.mrb[1].mxu0 }
 0x24b   : > { %v556_v58 = vpop.f32.mrb[2].mxu0 }
 0x24c   : > { %559 = vst [vmem:[#allocation12] sm:$0xff] %v554_v56  ;;  %v736_v59 = vpop.f32.mrb[3].mxu0 }
 0x24d PF: > { %p1201_p10 = scmp.eq.s32.totalorder %s666_s29, 1  ;;  %s1011_s14 = smov [#allocation12]  }
 0x24e   : > { %s569_s15 = sshll.u32 %s1011_s14, 4  ;;  %s1012_s16 = smov [#allocation13]   ;;  %s570_s15 = int_to_ptr.vmem [resolvable:$true] %s569_s15 }
 0x24f   : > { %s582_s17 = sshll.u32 %s1012_s16, 4  ;;  %s909_s18 = scalar_lea.vmem %s570_s15, 128  ;;  %s1205_s17 = int_to_ptr.vmem [resolvable:$true] %s582_s17 }
 0x250   : > { %p910_p11 = scmp.ne.s32.totalorder %s570_s15, %s909_s18  ;;  %p916_p6 = scmp.lt.s32.totalorder %s570_s15, %s570_s15 }
 0x251   : > { %p917_p0 = scmp.lt.s32.totalorder %s909_s18, %s909_s18 }
 0x252   : > { %p911_p12 = pnand %p910_p11, %p1201_p10 }
 0x253   : > { %p918_p1 = por %p917_p0, %p916_p6 }
 0x254   : > { %p912_p13 = pneg %p911_p12 }
 0x256   : > { %p919_p4 = pnand %p918_p1, %p912_p13 }
 0x258   : > { %922 = shalt.err (!%p919_p4)
}
 0x259   : > { %s923_s21 = scalar_lea.hbm %s1271_s6, 128 }
 0x25a   : > { %p924_p7 = scmp.ne.s32.totalorder %s1271_s6, %s923_s21  ;;  %p929_p8 = scmp.lt.u32.totalorder %s923_s21, %s1271_s6 }
 0x25c   : > { %p925_p9 = pnand %p924_p7, %p1201_p10 }
 0x25e   : > { %p926_p2 = pneg %p925_p9 }
 0x260   : > { %p931_p5 = pnand %p929_p8, %p926_p2 }
 0x262   : > { %934 = shalt.err (!%p931_p5)
}
 0x263   : > { %750 = dma.vmem_to_hbm [thread:$0]  (%p1201_p10), %s570_s15, 128, %s1271_s6, [#allocation8]  }
 0x264   : > { %s935_s30 = scalar_lea.vmem %s1205_s17, 128  ;;  %p942_p13 = scmp.lt.s32.totalorder %s1205_s17, %s1205_s17 }
 0x265   : > { %p936_p3 = scmp.ne.s32.totalorder %s1205_s17, %s935_s30  ;;  %p943_p6 = scmp.lt.s32.totalorder %s935_s30, %s935_s30 }
 0x267   : > { %p937_p11 = pnand %p936_p3, %p1201_p10  ;;  %p944_p0 = por %p943_p6, %p942_p13 }
 0x269   : > { %p938_p12 = pneg %p937_p11 }
 0x26b   : > { %p945_p1 = pnand %p944_p0, %p938_p12 }
 0x26d   : > { %948 = shalt.err (!%p945_p1)
}
 0x26e   : > { %s949_s19 = scalar_lea.hbm %s1272_s7, 128 }
 0x26f   : > { %p950_p4 = scmp.ne.s32.totalorder %s1272_s7, %s949_s19  ;;  %p955_p2 = scmp.lt.u32.totalorder %s949_s19, %s1272_s7 }
 0x271   : > { %p951_p7 = pnand %p950_p4, %p1201_p10 }
 0x273   : > { %p952_p9 = pneg %p951_p7 }
 0x275   : > { %p957_p8 = pnand %p955_p2, %p952_p9 }
 0x277   : > { %960 = shalt.err (!%p957_p8)
}
 0x278   : > { %752 = dma.vmem_to_hbm [thread:$0]  (%p1201_p10), %s1205_s17, 128, %s1272_s7, [#allocation14]  }
 0x279   : > { %982 = dma.done.wait (%p1201_p10), [#allocation8], 128  }
 0x27a   : > { %984 = vsyncadd (%p1201_p10), [#allocation8], 4294967168 }
 0x27b   : > { %986 = dma.done.wait (%p1201_p10), [#allocation14], 128  }
 0x27c   : > { %988 = vsyncadd (%p1201_p10), [#allocation14], 4294967168 }
 0x27d PF: > { %s22_s26 = sadd.s32 1, %s999_s26   ;;  %s1284_s24 = smov %s995_s25 }
 0x27e   : > { %p19_p5 = scmp.ge.s32.totalorder %s22_s26, 4   ;;  %s1285_s25 = smov %s1287_s10 }
 0x280   :  { %21 = sbr.rel (!%p19_p5) target bundleno = 5 (0x5), region = 108 }
 0x287   :  { %599 = vsyncpa [#allocation7], 1 }
 0x288   :  { %601 = vsyncpa [#allocation7 + $0x1], 1 }
 0x289   :  { %602 = vsyncpa [#allocation10], 1 }
 0x28a   :  { %603 = vsyncpa [#allocation8], 1 }
 0x28b   :  { %605 = vsyncpa [#allocation8 + $0x1], 1 }
 0x28c   :  { %606 = vsyncpa [#allocation14], 1 }

</bundles_post_ra>
